<compile_context>
chip_gen: v7x
topology: tpu7x:2x2x1
jax: 0.10.0
libtpu: 0.0.40
codegen_flags: <defaults>
</compile_context>

<pallas_src>
import jax
import jax.numpy as jnp
from jax.experimental import pallas as pl
from jax.experimental.pallas import tpu as pltpu


def mlp_kernel(x_ref, w1_ref, b1_ref, w2_ref, b2_ref, o_ref):
    x = x_ref[...]                                               # (bb, 10) f32
    h = jnp.dot(x, w1_ref[...],
                preferred_element_type=jnp.float32) + b1_ref[...]   # (bb, 5)
    h = jnp.maximum(h, 0.0)                                          # ReLU
    y = jnp.dot(h, w2_ref[...],
                preferred_element_type=jnp.float32) + b2_ref[...]   # (bb, 2)
    o_ref[...] = y.astype(o_ref.dtype)


def my_model_forward(x, w1, b1, w2, b2, *, block_b=8192, force_pallas=False):
    """x: (B, 10); w1: (10, 5); b1: (5,); w2: (5, 2); b2: (2,). Returns (B, 2).

    block_b must be a multiple of 8 (128 recommended). The batch is tiled into
    grid=(ceil(B/bb),); the last block may be ragged (Pallas masks OOB output
    stores; OOB input reads only feed masked-off rows). Weights/biases stay
    VMEM-resident across the whole grid.
    """
    B, d_in = x.shape
    d_h = w1.shape[1]
    d_out = w2.shape[1]

    # Tiny batches: a single-block pallas_call is pure launch/step overhead;
    # plain XLA fuses this trivially.
    if B < 512 and not force_pallas:
        h = jnp.maximum(x @ w1 + b1, 0.0)
        return h @ w2 + b2

    assert block_b % 8 == 0, "block_b must be a multiple of 8"
    bb = B if B <= block_b else block_b
    n_blocks = pl.cdiv(B, bb)

    b1r = b1.reshape(1, d_h)
    b2r = b2.reshape(1, d_out)

    flops = B * (2 * d_in * d_h + 2 * d_h * d_out)
    bytes_accessed = (B * (d_in + d_out) * 4
                      + (w1.size + b1.size + w2.size + b2.size) * 4)

    return pl.pallas_call(
        mlp_kernel,
        out_shape=jax.ShapeDtypeStruct((B, d_out), jnp.float32),
        grid=(n_blocks,),
        in_specs=[
            pl.BlockSpec((bb, d_in), lambda i: (i, 0)),      # streamed x tile
            pl.BlockSpec((d_in, d_h), lambda i: (0, 0)),     # resident params
            pl.BlockSpec((1, d_h), lambda i: (0, 0)),
            pl.BlockSpec((d_h, d_out), lambda i: (0, 0)),
            pl.BlockSpec((1, d_out), lambda i: (0, 0)),
        ],
        out_specs=pl.BlockSpec((bb, d_out), lambda i: (i, 0)),
        compiler_params=pltpu.CompilerParams(
            dimension_semantics=("parallel",),
            vmem_limit_bytes=32 * 1024 * 1024,
        ),
        cost_estimate=pl.CostEstimate(
            flops=flops, bytes_accessed=bytes_accessed, transcendentals=0),
    )(x, w1, b1r, w2, b2r)


def init_params(key):
    # Deterministic synthetic params matching nn.Linear(10,5) / nn.Linear(5,2).
    k1, k2, k3, k4 = jax.random.split(key, 4)
    # Stored as (in_features, out_features) == PyTorch weight transposed.
    w1 = jax.random.normal(k1, (10, 5), dtype=jnp.float32) * 0.1
    b1 = jax.random.normal(k2, (5,), dtype=jnp.float32) * 0.1
    w2 = jax.random.normal(k3, (5, 2), dtype=jnp.float32) * 0.1
    b2 = jax.random.normal(k4, (2,), dtype=jnp.float32) * 0.1
    return w1, b1, w2, b2


def reference_forward(x, w1, b1, w2, b2):
    h = jnp.maximum(x @ w1 + b1, 0.0)
    return h @ w2 + b2


if __name__ == "__main__":
    key = jax.random.PRNGKey(0)
    kx, kp, kx2 = jax.random.split(key, 3)
    w1, b1, w2, b2 = init_params(kp)

    # Small batch, single block: force the Pallas kernel path.
    x = jax.random.normal(kx, (8, 10), dtype=jnp.float32)
    out = jax.block_until_ready(my_model_forward(x, w1, b1, w2, b2,
                                                 force_pallas=True))
    ref = reference_forward(x, w1, b1, w2, b2)
    assert out.shape == (8, 2)
    assert jnp.allclose(out, ref, atol=1e-5, rtol=1e-5)

    # Small batch, default path (XLA bypass) must match too.
    out_bypass = jax.block_until_ready(my_model_forward(x, w1, b1, w2, b2))
    assert jnp.allclose(out_bypass, ref, atol=1e-5, rtol=1e-5)

    # Ragged multi-block grid path (1200 rows, block_b=256 -> 5 blocks, last
    # block ragged): exercises masked OOB output stores with no padding copy.
    x2 = jax.random.normal(kx2, (1200, 10), dtype=jnp.float32)
    out2 = jax.block_until_ready(my_model_forward(x2, w1, b1, w2, b2,
                                                  block_b=256,
                                                  force_pallas=True))
    ref2 = reference_forward(x2, w1, b1, w2, b2)
    assert out2.shape == (1200, 2)
    assert jnp.allclose(out2, ref2, atol=1e-5, rtol=1e-5)
    assert jnp.all(jnp.isfinite(out2))

    print("KERNEL_OK")
</pallas_src>

<mosaic_0001>
module attributes {stable_mosaic.version = 11 : i64} {
  func.func @mlp_kernel(%arg0: i32, %arg1: memref<8x10xf32, #tpu.memory_space<vmem>>, %arg2: memref<10x5xf32, #tpu.memory_space<vmem>>, %arg3: memref<1x5xf32, #tpu.memory_space<vmem>>, %arg4: memref<5x2xf32, #tpu.memory_space<vmem>>, %arg5: memref<1x2xf32, #tpu.memory_space<vmem>>, %arg6: memref<8x2xf32, #tpu.memory_space<vmem>>) attributes {dimension_semantics = [#tpu.dimension_semantics<parallel>], iteration_bounds = array<i64: 1>, scalar_prefetch = 0 : i64, scratch_operands = 0 : i64, tpu.core_type = #tpu.core_type<tc>, window_params = [{transform_indices = @transform_0, window_bounds = array<i64: 8, 10>}, {pipeline_mode = #tpu.pipeline_mode<synchronous>, transform_indices = @transform_1, window_bounds = array<i64: 10, 5>}, {pipeline_mode = #tpu.pipeline_mode<synchronous>, transform_indices = @transform_2, window_bounds = array<i64: 1, 5>}, {pipeline_mode = #tpu.pipeline_mode<synchronous>, transform_indices = @transform_3, window_bounds = array<i64: 5, 2>}, {pipeline_mode = #tpu.pipeline_mode<synchronous>, transform_indices = @transform_4, window_bounds = array<i64: 1, 2>}, {transform_indices = @transform_5, window_bounds = array<i64: 8, 2>}]} {
    %c0 = arith.constant 0 : index
    %c0_0 = arith.constant 0 : index
    %0 = vector.load %arg1[%c0, %c0_0] : memref<8x10xf32, #tpu.memory_space<vmem>>, vector<8x10xf32>
    %c0_1 = arith.constant 0 : index
    %c0_2 = arith.constant 0 : index
    %1 = vector.load %arg2[%c0_1, %c0_2] : memref<10x5xf32, #tpu.memory_space<vmem>>, vector<10x5xf32>
    %cst = arith.constant dense<0.000000e+00> : vector<8x5xf32>
    %2 = tpu.matmul %0, %1, %cst {dimension_numbers = #tpu.dot_dimension_numbers<[1], [0], [0], [1], [0, 0, 1, 1], [], []>} : vector<8x10xf32>, vector<10x5xf32>, vector<8x5xf32> -> vector<8x5xf32>
    %c0_3 = arith.constant 0 : index
    %c0_4 = arith.constant 0 : index
    %3 = vector.load %arg3[%c0_3, %c0_4] : memref<1x5xf32, #tpu.memory_space<vmem>>, vector<1x5xf32>
    %4 = vector.broadcast %3 : vector<1x5xf32> to vector<8x5xf32>
    %5 = arith.addf %2, %4 : vector<8x5xf32>
    %cst_5 = arith.constant 0.000000e+00 : f32
    %6 = vector.broadcast %cst_5 : f32 to vector<8x5xf32>
    %7 = arith.maximumf %5, %6 : vector<8x5xf32>
    %c0_6 = arith.constant 0 : index
    %c0_7 = arith.constant 0 : index
    %8 = vector.load %arg4[%c0_6, %c0_7] : memref<5x2xf32, #tpu.memory_space<vmem>>, vector<5x2xf32>
    %cst_8 = arith.constant dense<0.000000e+00> : vector<8x2xf32>
    %9 = tpu.matmul %7, %8, %cst_8 {dimension_numbers = #tpu.dot_dimension_numbers<[1], [0], [0], [1], [0, 0, 1, 1], [], []>} : vector<8x5xf32>, vector<5x2xf32>, vector<8x2xf32> -> vector<8x2xf32>
    %c0_9 = arith.constant 0 : index
    %c0_10 = arith.constant 0 : index
    %10 = vector.load %arg5[%c0_9, %c0_10] : memref<1x2xf32, #tpu.memory_space<vmem>>, vector<1x2xf32>
    %11 = vector.broadcast %10 : vector<1x2xf32> to vector<8x2xf32>
    %12 = arith.addf %9, %11 : vector<8x2xf32>
    %c0_11 = arith.constant 0 : index
    %c0_12 = arith.constant 0 : index
    %13 = vector.load %arg6[%c0_11, %c0_12] : memref<8x2xf32, #tpu.memory_space<vmem>>, vector<8x2xf32>
    tpu.vector_store %arg6[%c0_11, %c0_12], %12 {strides = array<i32>} : memref<8x2xf32, #tpu.memory_space<vmem>>, vector<8x2xf32>,
    return
  }
  func.func @transform_0(%arg0: i32) -> (i32, i32) {
    %c0_i32 = arith.constant 0 : i32
    %c0_i32_0 = arith.constant 0 : i32
    return %arg0, %c0_i32 : i32, i32
  }
  func.func @transform_1(%arg0: i32) -> (i32, i32) {
    %c0_i32 = arith.constant 0 : i32
    %c0_i32_0 = arith.constant 0 : i32
    %c0_i32_1 = arith.constant 0 : i32
    return %c0_i32, %c0_i32_0 : i32, i32
  }
  func.func @transform_2(%arg0: i32) -> (i32, i32) {
    %c0_i32 = arith.constant 0 : i32
    %c0_i32_0 = arith.constant 0 : i32
    %c0_i32_1 = arith.constant 0 : i32
    return %c0_i32, %c0_i32_0 : i32, i32
  }
  func.func @transform_3(%arg0: i32) -> (i32, i32) {
    %c0_i32 = arith.constant 0 : i32
    %c0_i32_0 = arith.constant 0 : i32
    %c0_i32_1 = arith.constant 0 : i32
    return %c0_i32, %c0_i32_0 : i32, i32
  }
  func.func @transform_4(%arg0: i32) -> (i32, i32) {
    %c0_i32 = arith.constant 0 : i32
    %c0_i32_0 = arith.constant 0 : i32
    %c0_i32_1 = arith.constant 0 : i32
    return %c0_i32, %c0_i32_0 : i32, i32
  }
  func.func @transform_5(%arg0: i32) -> (i32, i32) {
    %c0_i32 = arith.constant 0 : i32
    %c0_i32_0 = arith.constant 0 : i32
    return %arg0, %c0_i32 : i32, i32
  }
}

</mosaic_0001>

<bundles_post_ra>
// kernel: tpu_custom_call.1
= control target key start
LH: loop header
LB: loop body
LE: loop exit
PB: predicated region body
PF: predicated region fallthrough
CT: control target
= control target key end

     0   :  { %vm34_vm0 = vcmask 1041408   ;;  %v232_v0 = vmov 0.0|0.0   ;;  %vm233_vm1 = vmmov 1   ;;  %vm234_vm3 = vmmov 0   ;;  %s287_s1 = inlined_call_operand.vmem [shape: f32[10,5], index: 1, kind: input, shape index: {}]   ;;  %s288_s0 = inlined_call_operand.vmem [shape: f32[8,10], index: 0, kind: input, shape index: {}]   ;;  %s289_s3 = inlined_call_operand.vmem [shape: f32[5,2], index: 3, kind: input, shape index: {}]   ;;  %s290_s2 = inlined_call_operand.vmem [shape: f32[1,5], index: 2, kind: input, shape index: {}]   ;;  %s291_s4 = inlined_call_operand.vmem [shape: f32[1,2], index: 4, kind: input, shape index: {}]   ;;  %s292_s5 = inlined_call_operand.vmem [shape: f32[8,2], index: 5, kind: output, shape index: {}]  }
   0x1   :  { %224 = vmatprep.subr.bf16.mxu0 %v232_v0  ;;  %v21_v1 = vld [vmem:[%s287_s1] sm:$0xff]  ;;  %v22_v2 = vld [vmem:[%s287_s1 + $0x8] sm:$0x3]  ;;  %vm226_vm2 = vmpackc.low %vm34_vm0, %vm233_vm1  ;;  %v235_v4 = vmov 0.0   ;;  %vm30_vm4 = vcmask 80896   ;;  %vm121_vm5 = vcmask 1044480  }
   0x2   :  { %v225_v3 = vpack.c.bf16 %v22_v2, %v21_v1  ;;  %216 = vmatprep.mubr.msk.f32.mxu0 %vm234_vm3, %v235_v4  ;;  %219 = vmatprep.subr.mxu1 %v235_v4  ;;  %v20_v5 = vld [vmem:[%s288_s0] sm:$0xff]  ;;  %vm117_vm6 = vcmask 39936   ;;  %vm195_vm7 = vcmask 15360  }
   0x3   :  { %221 = vmatprep.mubr.msk.f32.mxu1 %vm234_vm3, %v235_v4  ;;  %v109_v6 = vld [vmem:[%s289_s3] sm:$0x1f] }
   0x4   :  { %227 = vmatpush3.bf16.msk.msra.mxu0 %vm226_vm2, %v225_v3  ;;  %220 = vmatpush3.msk.msra.mxu1 %vm121_vm5, %v109_v6  ;;  %v201_v7 = vld [vmem:[%s290_s2] ss:$0 sm:$0xff] }
   0x5   :  { %v204_v12 = vld [vmem:[%s291_s4] ss:$0 sm:$0xff] }
   0x7   :  { %217 = vmatmul.mubr.msk.f32.vlgmr.msra.gmra.mrb[0].mxu0 %vm30_vm4, %v20_v5 }
  0xda   :  { %v104_v8 = vpop.f32.mrb[0].mxu0 }
  0xdb   :  { %v105_v9 = vadd.f32 %v201_v7, %v104_v8  ;;  %v218_v10 = vpop.f32.mrb[1].mxu0 }
  0xdd   :  { %v108_v11 = vmax.f32 %v105_v9, 0.0 }
  0xdf   :  { %222 = vmatmul.mubr.msk.f32.vlgmr.msra.gmra.mrb[0].mxu1 %vm117_vm6, %v108_v11 }
 0x1b2   :  { %v191_v13 = vpop.f32.mrb[0].mxu1 }
 0x1b3   :  { %v192_v14 = vadd.f32 %v204_v12, %v191_v13  ;;  %v223_v15 = vpop.f32.mrb[1].mxu1 }
 0x1b5   :  { %196 = vst.msk [vmem:[%s292_s5] sm:$0xff] %vm195_vm7, %v192_v14 }

</bundles_post_ra>
